<compile_context>
chip_gen: v6e
topology: v6e:2x2x1
jax: 0.10.0
libtpu: 0.0.40
codegen_flags: <defaults>
</compile_context>

<pallas_src>
import jax
import jax.numpy as jnp
from jax.experimental import pallas as pl
from jax.experimental.pallas import tpu as pltpu


def _leaky_relu_kernel(x_ref, o_ref, *, alpha):
    x = x_ref[...]
    o_ref[...] = jnp.maximum(alpha * x, x)


def _min_sublanes(dtype) -> int:
    itemsize = jnp.dtype(dtype).itemsize
    # 8 sublanes for 32-bit, 16 for 16-bit, 32 for 8-bit dtypes.
    return max(8, 32 // max(1, itemsize))


def leaky_relu(x, alpha=0.2, target_block_bytes=2 * 1024 * 1024):
    """Pallas TPU implementation of torch.max(alpha * x, x), elementwise."""
    orig_shape = x.shape
    dtype = x.dtype
    n = x.size
    if n == 0:
        return x

    min_sub = _min_sublanes(dtype)
    itemsize = jnp.dtype(dtype).itemsize

    # ---- Rare ragged path: element count not a multiple of 128 lanes. ----
    if n % 128 != 0:
        # TODO(synk): ragged element count needs one pad + slice pass; NCHW
        # activations in this discriminator are always multiples of 128.
        pad = (-n) % 128
        flat = jnp.pad(x.reshape(-1), (0, pad))
        out_flat = leaky_relu(flat, alpha, target_block_bytes)
        return out_flat[:n].reshape(orig_shape)

    # ---- Common path: free reshape into a lane-dense (rows, width) slab. ----
    # Prefer the widest lane dimension that still leaves >= min_sub rows.
    width = 0
    for w in (2048, 1024, 512, 256, 128):
        if n % w == 0 and n // w >= min_sub:
            width = w
            break
    if width == 0:
        for w in (2048, 1024, 512, 256, 128):
            if n % w == 0:
                width = w
                break
    rows = n // width

    bytes_per_row = width * itemsize
    target_rows = max(min_sub,
                      (target_block_bytes // bytes_per_row // min_sub) * min_sub)

    if rows < min_sub:
        # Tiny tensor: one full-extent block (block dim == array dim is legal).
        br = rows
    else:
        max_full = (rows // min_sub) * min_sub
        br = min(target_rows, max_full)
        # Ensure >= 2 grid blocks when there is enough work, so v7x's two
        # TensorCores both get a share of the "parallel" axis.
        if pl.cdiv(rows, br) < 2 and rows >= 2 * min_sub:
            br = max(min_sub, ((rows // 2) // min_sub) * min_sub)

    grid_n = pl.cdiv(rows, br)
    x2d = x.reshape(rows, width)

    out2d = pl.pallas_call(
        lambda x_ref, o_ref: _leaky_relu_kernel(x_ref, o_ref, alpha=alpha),
        out_shape=jax.ShapeDtypeStruct((rows, width), dtype),
        grid_spec=pltpu.PrefetchScalarGridSpec(
            num_scalar_prefetch=0,
            grid=(grid_n,),
            in_specs=[pl.BlockSpec((br, width), lambda i: (i, 0))],
            out_specs=pl.BlockSpec((br, width), lambda i: (i, 0)),
        ),
        compiler_params=pltpu.CompilerParams(
            dimension_semantics=("parallel",),
            vmem_limit_bytes=32 * 1024 * 1024,
        ),
    )(x2d)

    return out2d.reshape(orig_shape)


if __name__ == "__main__":
    key = jax.random.PRNGKey(0)
    # NCHW input consistent with the discriminator module: batch=2, channels=4,
    # spatial=16x16.
    x = jax.random.normal(key, (2, 4, 16, 16), dtype=jnp.float32)

    y = leaky_relu(x, alpha=0.2)
    y = jax.block_until_ready(y)

    # Reference (plain JAX, matches torch.max(alpha * x, x)).
    y_ref = jnp.maximum(0.2 * x, x)
    assert y.shape == x.shape and y.dtype == x.dtype
    assert jnp.allclose(y, y_ref, atol=1e-6, rtol=1e-6)

    # Also exercise a larger, multi-block case (and bf16) for coverage.
    xb = jax.random.normal(jax.random.PRNGKey(1), (8, 64, 64, 64),
                           dtype=jnp.bfloat16)
    yb = jax.block_until_ready(leaky_relu(xb, alpha=0.2))
    yb_ref = jnp.maximum(jnp.bfloat16(0.2) * xb, xb)
    assert yb.shape == xb.shape and yb.dtype == xb.dtype
    assert jnp.allclose(yb.astype(jnp.float32), yb_ref.astype(jnp.float32),
                        atol=1e-2, rtol=1e-2)

    print("KERNEL_OK")
</pallas_src>

<mosaic_0001>
module attributes {stable_mosaic.version = 11 : i64} {
  func.func @_lambda_(%arg0: i32, %arg1: memref<8x256xf32, #tpu.memory_space<vmem>>, %arg2: memref<8x256xf32, #tpu.memory_space<vmem>>) attributes {dimension_semantics = [#tpu.dimension_semantics<parallel>], iteration_bounds = array<i64: 1>, scalar_prefetch = 0 : i64, scratch_operands = 0 : i64, tpu.core_type = #tpu.core_type<tc>, window_params = [{transform_indices = @transform_0, window_bounds = array<i64: 8, 256>}, {transform_indices = @transform_1, window_bounds = array<i64: 8, 256>}]} {
    %c0 = arith.constant 0 : index
    %c0_0 = arith.constant 0 : index
    %0 = vector.load %arg1[%c0, %c0_0] : memref<8x256xf32, #tpu.memory_space<vmem>>, vector<8x256xf32>
    %cst = arith.constant 2.000000e-01 : f32
    %1 = vector.broadcast %cst : f32 to vector<8x256xf32>
    %2 = arith.mulf %1, %0 : vector<8x256xf32>
    %3 = arith.maximumf %2, %0 : vector<8x256xf32>
    %c0_1 = arith.constant 0 : index
    %c0_2 = arith.constant 0 : index
    %4 = vector.load %arg2[%c0_1, %c0_2] : memref<8x256xf32, #tpu.memory_space<vmem>>, vector<8x256xf32>
    tpu.vector_store %arg2[%c0_1, %c0_2], %3 {strides = array<i32>} : memref<8x256xf32, #tpu.memory_space<vmem>>, vector<8x256xf32>,
    return
  }
  func.func @transform_0(%arg0: i32) -> (i32, i32) {
    %c0_i32 = arith.constant 0 : i32
    %c0_i32_0 = arith.constant 0 : i32
    return %arg0, %c0_i32 : i32, i32
  }
  func.func @transform_1(%arg0: i32) -> (i32, i32) {
    %c0_i32 = arith.constant 0 : i32
    %c0_i32_0 = arith.constant 0 : i32
    return %arg0, %c0_i32 : i32, i32
  }
}

</mosaic_0001>

<bundles_post_ra>
// kernel: tpu_custom_call.1
= control target key start
LH: loop header
LB: loop body
LE: loop exit
PB: predicated region body
PF: predicated region fallthrough
CT: control target
= control target key end

     0   :  { %6 = vsyncpa [#allocation3], 0  ;;  %s108_s0 = inlined_call_operand.hbm [shape: f32[8,256], index: 0, kind: input, shape index: {}]   ;;  %s109_s1 = inlined_call_operand.hbm [shape: f32[8,256], index: 1, kind: output, shape index: {}]  }
   0x1   :  { %7 = vsyncpa [#allocation4], 0  ;;  %s90_s6 = smov [#allocation2]  }
   0x2   :  { %s14_s7 = sshll.u32 %s90_s6, 4  ;;  %s15_s7 = int_to_ptr.vmem [resolvable:$true] %s14_s7 }
   0x3   :  { %s54_s8 = scalar_lea.vmem %s15_s7, 256  ;;  %p59_p1 = scmp.lt.s32.totalorder %s15_s7, %s15_s7 }
   0x4   :  { %p55_p0 = scmp.ne.s32.totalorder %s15_s7, %s54_s8  ;;  %p60_p2 = scmp.lt.s32.totalorder %s54_s8, %s54_s8 }
   0x6   :  { %p61_p3 = por %p60_p2, %p59_p1 }
   0x8   :  { %p62_p4 = pnand %p61_p3, %p55_p0 }
   0xa   :  { %65 = shalt.err (!%p62_p4)
}
   0xb   :  { %17 = dma.hbm_to_vmem [thread:$0]  %s108_s0, 256, %s15_s7, [#allocation3]  }
   0xc   :  { %86 = dma.done.wait [#allocation3], 256  }
   0xd   :  { %87 = vsyncadd [#allocation3], 4294967040  ;;  %v21_v0 = vld [vmem:[#allocation2] sm:$0xff]  ;;  %v22_v1 = vld [vmem:[#allocation2 + $0x8] sm:$0xff]  ;;  %s91_s11 = smov [#allocation5]  }
   0xe   :  { %s35_s12 = sshll.u32 %s91_s11, 4  ;;  %v23_v2 = vmul.f32 0.2, %v21_v0  ;;  %v24_v3 = vmul.f32 0.2, %v22_v1  ;;  %s36_s12 = int_to_ptr.vmem [resolvable:$true] %s35_s12 }
   0xf   :  { %s66_s13 = scalar_lea.vmem %s36_s12, 256  ;;  %p71_p6 = scmp.lt.s32.totalorder %s36_s12, %s36_s12 }
  0x10   :  { %v25_v4 = vmax.f32 %v23_v2, %v21_v0  ;;  %v26_v5 = vmax.f32 %v24_v3, %v22_v1  ;;  %p67_p5 = scmp.ne.s32.totalorder %s36_s12, %s66_s13  ;;  %p72_p7 = scmp.lt.s32.totalorder %s66_s13, %s66_s13 }
  0x12   :  { %27 = vst [vmem:[#allocation5] sm:$0xff] %v25_v4  ;;  %28 = vst [vmem:[#allocation5 + $0x8] sm:$0xff] %v26_v5  ;;  %p73_p8 = por %p72_p7, %p71_p6 }
  0x14   :  { %p74_p9 = pnand %p73_p8, %p67_p5 }
  0x16   :  { %77 = shalt.err (!%p74_p9)
}
  0x17   :  { %38 = dma.vmem_to_hbm [thread:$0]  %s36_s12, 256, %s109_s1, [#allocation4]  }
  0x18   :  { %88 = dma.done.wait [#allocation4], 256  }
  0x19   :  { %89 = vsyncadd [#allocation4], 4294967040 }
  0x1a   :  { %42 = vsyncpa [#allocation3], 1 }
  0x1b   :  { %43 = vsyncpa [#allocation4], 1 }

</bundles_post_ra>
